<compile_context>
chip_gen: v7x
topology: tpu7x:2x2x1
jax: 0.10.0
libtpu: 0.0.40
codegen_flags: <defaults>
</compile_context>

<pallas_src>
from functools import partial

import jax
import jax.numpy as jnp
from jax import lax
from jax.experimental import pallas as pl
from jax.experimental.pallas import tpu as pltpu

NEG_SLOPE_ATTN = 0.2    # leaky_relu on attention logits (DGL GATConv default)
NEG_SLOPE_ACT = 0.01    # nn.LeakyReLU() default, used as the layer activation
MASK_VALUE = -1e30
HEAD_PAD = 8            # sublane-padded head axis for the small el/er tensors


def _round_up(a, b):
    return ((a + b - 1) // b) * b


def _leaky(x, slope):
    # leaky_relu with slope < 1:  max(x, slope * x)
    return jnp.maximum(x, slope * x)


# ----------------------------- projection kernel --------------------------- #

def gat_project_kernel(x_ref, wcat_ref, alp_ref, arp_ref,
                       fh_ref, elt_ref, er_ref):
    """Per-layer projection, computed ONCE (not per dst tile).

    fh   = x @ W_cat                     (N, H*F)
    el^T = AL_blockdiag @ fh^T           (HEAD_PAD, N)   lane-oriented src logits
    er   = fh @ AR_blockdiag             (N, HEAD_PAD)   dst logits
    """
    fh = jnp.dot(x_ref[...], wcat_ref[...], preferred_element_type=jnp.float32)
    fh_ref[...] = fh
    elt_ref[...] = lax.dot_general(alp_ref[...], fh, (((1,), (1,)), ((), ())),
                                   preferred_element_type=jnp.float32)
    er_ref[...] = jnp.dot(fh, arp_ref[...], preferred_element_type=jnp.float32)


def _proj_cost(N, din, hf):
    flops = 2 * N * din * hf + 4 * HEAD_PAD * hf * N
    bytes_accessed = 4 * (N * din + din * hf + 2 * HEAD_PAD * hf
                          + N * hf + 2 * HEAD_PAD * N)
    return pl.CostEstimate(flops=flops, transcendentals=0,
                           bytes_accessed=bytes_accessed)


def gat_project(x, wcat, alp, arp):
    N_pad, din = x.shape
    hf = wcat.shape[1]
    return pl.pallas_call(
        gat_project_kernel,
        out_shape=(jax.ShapeDtypeStruct((N_pad, hf), jnp.float32),
                   jax.ShapeDtypeStruct((HEAD_PAD, N_pad), jnp.float32),
                   jax.ShapeDtypeStruct((N_pad, HEAD_PAD), jnp.float32)),
        grid=(1,),
        in_specs=[pl.BlockSpec((N_pad, din), lambda i: (0, 0)),
                  pl.BlockSpec((din, hf), lambda i: (0, 0)),
                  pl.BlockSpec((HEAD_PAD, hf), lambda i: (0, 0)),
                  pl.BlockSpec((hf, HEAD_PAD), lambda i: (0, 0))],
        out_specs=(pl.BlockSpec((N_pad, hf), lambda i: (0, 0)),
                   pl.BlockSpec((HEAD_PAD, N_pad), lambda i: (0, 0)),
                   pl.BlockSpec((N_pad, HEAD_PAD), lambda i: (0, 0))),
        compiler_params=pltpu.CompilerParams(
            dimension_semantics=("arbitrary",),
            vmem_limit_bytes=32 * 1024 * 1024),
        cost_estimate=_proj_cost(N_pad, din, hf),
    )(x, wcat, alp, arp)


# ----------------------------- attention kernels ---------------------------- #

def _gat_heads(adj_ref, fh_ref, elt_ref, er_ref, b_ref, *, num_heads, out_feats):
    """GAT attention for one dst-node tile.

    Returns a list of `num_heads` arrays (tile_dst, out_feats): aggregated,
    biased, LeakyReLU(0.01)-activated head outputs.
    """
    H, F = num_heads, out_feats
    fh = fh_ref[...]                                         # (N_pad, H*F) src feats
    # Additive edge mask, hoisted out of the head loop (one select, not H).
    mask_add = jnp.where(adj_ref[...].astype(jnp.float32) > 0.5,
                         jnp.float32(0.0), jnp.float32(MASK_VALUE))

    heads = []
    for h in range(H):                                       # static, H == 3
        el_row = elt_ref[h:h + 1, :]                         # (1, N_pad) lane-oriented
        er_col = er_ref[:, h:h + 1]                          # (tile_dst, 1)
        e = _leaky(er_col + el_row, NEG_SLOPE_ATTN) + mask_add
        m = jnp.max(e, axis=-1, keepdims=True)
        p = jnp.exp(e - m)                                   # masked logits underflow to 0
        s = jnp.sum(p, axis=-1, keepdims=True)
        alpha = p * pl.reciprocal(s, approx=True)            # EUP reciprocal
        rst = jnp.dot(alpha, fh[:, h * F:(h + 1) * F],
                      preferred_element_type=jnp.float32)    # (tile_dst, F)
        rst = rst + b_ref[h:h + 1, :]                        # GATConv output bias
        heads.append(_leaky(rst, NEG_SLOPE_ACT))             # layer activation
    return heads


def gat_layer_kernel(adj_ref, fh_ref, elt_ref, er_ref, b_ref, out_ref,
                     *, num_heads, out_feats):
    """Intermediate GAT layer: writes the (tile_dst, H*F) head-concatenated
    output directly (same ordering as torch `feat.view(N, -1)`)."""
    heads = _gat_heads(adj_ref, fh_ref, elt_ref, er_ref, b_ref,
                       num_heads=num_heads, out_feats=out_feats)
    F = out_feats
    for h, act in enumerate(heads):
        out_ref[:, h * F:(h + 1) * F] = act


def gat_last_layer_kernel(adj_ref, fh_ref, elt_ref, er_ref, b_ref,
                          wlin_ref, blin_ref, out_ref,
                          *, num_heads, out_feats):
    """Last GAT layer with the encoder's final nn.Linear fused in."""
    heads = _gat_heads(adj_ref, fh_ref, elt_ref, er_ref, b_ref,
                       num_heads=num_heads, out_feats=out_feats)
    F = out_feats
    # summing per-head blocks of W_lin == concat(heads) @ W_lin
    acc = jnp.dot(heads[0], wlin_ref[0:F, :], preferred_element_type=jnp.float32)
    for h in range(1, num_heads):
        acc = acc + jnp.dot(heads[h], wlin_ref[h * F:(h + 1) * F, :],
                            preferred_element_type=jnp.float32)
    out_ref[...] = acc + blin_ref[...]


def _attn_cost(N, hf, num_heads, out_feats, tile_dst, fused_linear):
    H, F = num_heads, out_feats
    flops = H * (8 * N * N + 2 * N * N * F) + 3 * N * N
    if fused_linear:
        flops += 2 * N * hf * F
    transcendentals = H * N * N
    out_cols = F if fused_linear else hf
    bytes_accessed = (N * N                                   # int8 adjacency
                      + N * hf * 4                            # fh (resident)
                      + HEAD_PAD * N * 4 + N * HEAD_PAD * 4   # el^T, er
                      + N * out_cols * 4                      # output
                      + hf * (F + 1) * 4)                     # bias / fused linear
    return pl.CostEstimate(flops=flops, transcendentals=transcendentals,
                           bytes_accessed=bytes_accessed)


def _compiler_params():
    return pltpu.CompilerParams(dimension_semantics=("parallel",),
                                vmem_limit_bytes=32 * 1024 * 1024)


def gat_layer(adj, fh, elt, er, b, *, num_heads, out_feats, tile_dst):
    N_pad = adj.shape[0]
    hf = num_heads * out_feats
    n_tiles = N_pad // tile_dst
    kernel = partial(gat_layer_kernel, num_heads=num_heads, out_feats=out_feats)
    return pl.pallas_call(
        kernel,
        out_shape=jax.ShapeDtypeStruct((N_pad, hf), jnp.float32),
        grid=(n_tiles,),
        in_specs=[
            pl.BlockSpec((tile_dst, N_pad), lambda i: (i, 0)),     # adj dst tile
            pl.BlockSpec((N_pad, hf), lambda i: (0, 0)),           # fh resident
            pl.BlockSpec((HEAD_PAD, N_pad), lambda i: (0, 0)),     # el^T resident
            pl.BlockSpec((tile_dst, HEAD_PAD), lambda i: (i, 0)),  # er dst tile
            pl.BlockSpec(b.shape, lambda i: (0, 0)),
        ],
        out_specs=pl.BlockSpec((tile_dst, hf), lambda i: (i, 0)),
        compiler_params=_compiler_params(),
        cost_estimate=_attn_cost(N_pad, hf, num_heads, out_feats, tile_dst,
                                 fused_linear=False),
    )(adj, fh, elt, er, b)


def gat_last_layer(adj, fh, elt, er, b, wlin, blin, *,
                   num_heads, out_feats, tile_dst):
    N_pad = adj.shape[0]
    hf = num_heads * out_feats
    n_tiles = N_pad // tile_dst
    kernel = partial(gat_last_layer_kernel, num_heads=num_heads,
                     out_feats=out_feats)
    return pl.pallas_call(
        kernel,
        out_shape=jax.ShapeDtypeStruct((N_pad, out_feats), jnp.float32),
        grid=(n_tiles,),
        in_specs=[
            pl.BlockSpec((tile_dst, N_pad), lambda i: (i, 0)),     # adj dst tile
            pl.BlockSpec((N_pad, hf), lambda i: (0, 0)),           # fh resident
            pl.BlockSpec((HEAD_PAD, N_pad), lambda i: (0, 0)),     # el^T resident
            pl.BlockSpec((tile_dst, HEAD_PAD), lambda i: (i, 0)),  # er dst tile
            pl.BlockSpec(b.shape, lambda i: (0, 0)),
            pl.BlockSpec(wlin.shape, lambda i: (0, 0)),
            pl.BlockSpec(blin.shape, lambda i: (0, 0)),
        ],
        out_specs=pl.BlockSpec((tile_dst, out_feats), lambda i: (i, 0)),
        compiler_params=_compiler_params(),
        cost_estimate=_attn_cost(N_pad, hf, num_heads, out_feats, tile_dst,
                                 fused_linear=True),
    )(adj, fh, elt, er, b, wlin, blin)


# ----------------------------- module --------------------------------------- #

class GATEncoderPallas:
    """JAX/Pallas port of GATEncoder (plain-tensor input path)."""

    def __init__(self, key, in_feats, out_feats, num_heads=3, num_layers=1,
                 tile_dst=256):
        assert tile_dst % 32 == 0, "tile_dst must be a multiple of 32 (int8 adj)"
        assert num_heads <= HEAD_PAD
        self.num_heads = num_heads
        self.out_feats = out_feats
        self.tile_dst = tile_dst
        self.layers = []
        hf = num_heads * out_feats
        dims = [in_feats] + [hf] * (num_layers - 1)
        for din in dims:
            key, k1, k2, k3, k4 = jax.random.split(key, 5)
            # per-head fc weights concatenated along features: (Din, H*F),
            # head h occupies columns [h*F, (h+1)*F) — same order as
            # torch's (N, H, F).view(N, -1).
            wcat = jax.random.normal(k1, (din, hf), jnp.float32) * 0.2
            al = jax.random.normal(k2, (num_heads, out_feats), jnp.float32) * 0.2
            ar = jax.random.normal(k3, (num_heads, out_feats), jnp.float32) * 0.2
            b = jax.random.normal(k4, (num_heads, out_feats), jnp.float32) * 0.05
            # Pack attention vectors block-diagonally so the projection kernel
            # gets all heads' logits from a single MXU dot each:
            #   el^T = alp @ fh^T  (HEAD_PAD, N);  er = fh @ arp  (N, HEAD_PAD)
            alp = jnp.zeros((HEAD_PAD, hf), jnp.float32)
            arp = jnp.zeros((hf, HEAD_PAD), jnp.float32)
            for h in range(num_heads):
                alp = alp.at[h, h * out_feats:(h + 1) * out_feats].set(al[h])
                arp = arp.at[h * out_feats:(h + 1) * out_feats, h].set(ar[h])
            self.layers.append((wcat, alp, arp, b))
        key, k5, k6 = jax.random.split(key, 3)
        self.w_lin = jax.random.normal(k5, (hf, out_feats), jnp.float32) * 0.2
        self.b_lin = jax.random.normal(k6, (1, out_feats), jnp.float32) * 0.05

    def __call__(self, adj, x):
        N = x.shape[0]
        tile = min(self.tile_dst, _round_up(N, 32))
        N_pad = _round_up(N, tile)
        # pad nodes: padded rows/cols have no edges -> masked out everywhere.
        x_p = jnp.zeros((N_pad, x.shape[1]), jnp.float32).at[:N].set(
            x.astype(jnp.float32))
        adj_p = jnp.zeros((N_pad, N_pad), jnp.int8).at[:N, :N].set(
            (adj != 0).astype(jnp.int8))

        h = x_p
        n_layers = len(self.layers)
        for li, (wcat, alp, arp, b) in enumerate(self.layers):
            fh, elt, er = gat_project(h, wcat, alp, arp)
            if li == n_layers - 1:
                h = gat_last_layer(adj_p, fh, elt, er, b,
                                   self.w_lin, self.b_lin,
                                   num_heads=self.num_heads,
                                   out_feats=self.out_feats, tile_dst=tile)
            else:
                h = gat_layer(adj_p, fh, elt, er, b,
                              num_heads=self.num_heads,
                              out_feats=self.out_feats, tile_dst=tile)
        return h[:N]                                        # (N, out_feats)


# ----------------------------- demo ----------------------------------------- #

if __name__ == "__main__":
    key = jax.random.PRNGKey(0)
    N, in_feats, out_feats, num_heads, num_layers = 64, 8, 8, 3, 2
    tile_dst = 32          # 2 dst tiles at N=64 -> exercises the pipelined grid

    key, kx, ka = jax.random.split(key, 3)
    x = jax.random.normal(kx, (N, in_feats), jnp.float32)
    adj_rand = jax.random.uniform(ka, (N, N)) < 0.2
    adj = (adj_rand | jnp.eye(N, dtype=bool)).astype(jnp.int8)   # self-loops

    enc = GATEncoderPallas(key, in_feats, out_feats,
                           num_heads=num_heads, num_layers=num_layers,
                           tile_dst=tile_dst)
    y = enc(adj, x)
    jax.block_until_ready(y)
    assert y.shape == (N, out_feats) and y.dtype == jnp.float32
    assert bool(jnp.all(jnp.isfinite(y)))
    print("KERNEL_OK")
</pallas_src>

<mosaic_0001>
module attributes {stable_mosaic.version = 11 : i64} {
  func.func @gat_project_kernel(%arg0: i32, %arg1: memref<64x8xf32, #tpu.memory_space<vmem>>, %arg2: memref<8x24xf32, #tpu.memory_space<vmem>>, %arg3: memref<8x24xf32, #tpu.memory_space<vmem>>, %arg4: memref<24x8xf32, #tpu.memory_space<vmem>>, %arg5: memref<64x24xf32, #tpu.memory_space<vmem>>, %arg6: memref<8x64xf32, #tpu.memory_space<vmem>>, %arg7: memref<64x8xf32, #tpu.memory_space<vmem>>) attributes {dimension_semantics = [#tpu.dimension_semantics<arbitrary>], iteration_bounds = array<i64: 1>, scalar_prefetch = 0 : i64, scratch_operands = 0 : i64, tpu.core_type = #tpu.core_type<tc>, window_params = [{pipeline_mode = #tpu.pipeline_mode<synchronous>, transform_indices = @transform_0, window_bounds = array<i64: 64, 8>}, {pipeline_mode = #tpu.pipeline_mode<synchronous>, transform_indices = @transform_1, window_bounds = array<i64: 8, 24>}, {pipeline_mode = #tpu.pipeline_mode<synchronous>, transform_indices = @transform_2, window_bounds = array<i64: 8, 24>}, {pipeline_mode = #tpu.pipeline_mode<synchronous>, transform_indices = @transform_3, window_bounds = array<i64: 24, 8>}, {pipeline_mode = #tpu.pipeline_mode<synchronous>, transform_indices = @transform_4, window_bounds = array<i64: 64, 24>}, {pipeline_mode = #tpu.pipeline_mode<synchronous>, transform_indices = @transform_5, window_bounds = array<i64: 8, 64>}, {pipeline_mode = #tpu.pipeline_mode<synchronous>, transform_indices = @transform_6, window_bounds = array<i64: 64, 8>}]} {
    %c0 = arith.constant 0 : index
    %c0_0 = arith.constant 0 : index
    %0 = vector.load %arg1[%c0, %c0_0] : memref<64x8xf32, #tpu.memory_space<vmem>>, vector<64x8xf32>
    %c0_1 = arith.constant 0 : index
    %c0_2 = arith.constant 0 : index
    %1 = vector.load %arg2[%c0_1, %c0_2] : memref<8x24xf32, #tpu.memory_space<vmem>>, vector<8x24xf32>
    %cst = arith.constant dense<0.000000e+00> : vector<64x24xf32>
    %2 = tpu.matmul %0, %1, %cst {dimension_numbers = #tpu.dot_dimension_numbers<[1], [0], [0], [1], [0, 0, 1, 1], [], []>} : vector<64x8xf32>, vector<8x24xf32>, vector<64x24xf32> -> vector<64x24xf32>
    %c0_3 = arith.constant 0 : index
    %c0_4 = arith.constant 0 : index
    %3 = vector.load %arg5[%c0_3, %c0_4] : memref<64x24xf32, #tpu.memory_space<vmem>>, vector<64x24xf32>
    tpu.vector_store %arg5[%c0_3, %c0_4], %2 {strides = array<i32>} : memref<64x24xf32, #tpu.memory_space<vmem>>, vector<64x24xf32>,
    %c0_5 = arith.constant 0 : index
    %c0_6 = arith.constant 0 : index
    %4 = vector.load %arg3[%c0_5, %c0_6] : memref<8x24xf32, #tpu.memory_space<vmem>>, vector<8x24xf32>
    %cst_7 = arith.constant dense<0.000000e+00> : vector<8x64xf32>
    %5 = tpu.matmul %4, %2, %cst_7 {dimension_numbers = #tpu.dot_dimension_numbers<[1], [1], [0], [0], [0, 0, 1, 0], [], []>} : vector<8x24xf32>, vector<64x24xf32>, vector<8x64xf32> -> vector<8x64xf32>
    %c0_8 = arith.constant 0 : index
    %c0_9 = arith.constant 0 : index
    %6 = vector.load %arg6[%c0_8, %c0_9] : memref<8x64xf32, #tpu.memory_space<vmem>>, vector<8x64xf32>
    tpu.vector_store %arg6[%c0_8, %c0_9], %5 {strides = array<i32>} : memref<8x64xf32, #tpu.memory_space<vmem>>, vector<8x64xf32>,
    %c0_10 = arith.constant 0 : index
    %c0_11 = arith.constant 0 : index
    %7 = vector.load %arg4[%c0_10, %c0_11] : memref<24x8xf32, #tpu.memory_space<vmem>>, vector<24x8xf32>
    %cst_12 = arith.constant dense<0.000000e+00> : vector<64x8xf32>
    %8 = tpu.matmul %2, %7, %cst_12 {dimension_numbers = #tpu.dot_dimension_numbers<[1], [0], [0], [1], [0, 0, 1, 1], [], []>} : vector<64x24xf32>, vector<24x8xf32>, vector<64x8xf32> -> vector<64x8xf32>
    %c0_13 = arith.constant 0 : index
    %c0_14 = arith.constant 0 : index
    %9 = vector.load %arg7[%c0_13, %c0_14] : memref<64x8xf32, #tpu.memory_space<vmem>>, vector<64x8xf32>
    tpu.vector_store %arg7[%c0_13, %c0_14], %8 {strides = array<i32>} : memref<64x8xf32, #tpu.memory_space<vmem>>, vector<64x8xf32>,
    return
  }
  func.func @transform_0(%arg0: i32) -> (i32, i32) {
    %c0_i32 = arith.constant 0 : i32
    %c0_i32_0 = arith.constant 0 : i32
    %c0_i32_1 = arith.constant 0 : i32
    return %c0_i32, %c0_i32_0 : i32, i32
  }
  func.func @transform_1(%arg0: i32) -> (i32, i32) {
    %c0_i32 = arith.constant 0 : i32
    %c0_i32_0 = arith.constant 0 : i32
    %c0_i32_1 = arith.constant 0 : i32
    return %c0_i32, %c0_i32_0 : i32, i32
  }
  func.func @transform_2(%arg0: i32) -> (i32, i32) {
    %c0_i32 = arith.constant 0 : i32
    %c0_i32_0 = arith.constant 0 : i32
    %c0_i32_1 = arith.constant 0 : i32
    return %c0_i32, %c0_i32_0 : i32, i32
  }
  func.func @transform_3(%arg0: i32) -> (i32, i32) {
    %c0_i32 = arith.constant 0 : i32
    %c0_i32_0 = arith.constant 0 : i32
    %c0_i32_1 = arith.constant 0 : i32
    return %c0_i32, %c0_i32_0 : i32, i32
  }
  func.func @transform_4(%arg0: i32) -> (i32, i32) {
    %c0_i32 = arith.constant 0 : i32
    %c0_i32_0 = arith.constant 0 : i32
    %c0_i32_1 = arith.constant 0 : i32
    return %c0_i32, %c0_i32_0 : i32, i32
  }
  func.func @transform_5(%arg0: i32) -> (i32, i32) {
    %c0_i32 = arith.constant 0 : i32
    %c0_i32_0 = arith.constant 0 : i32
    %c0_i32_1 = arith.constant 0 : i32
    return %c0_i32, %c0_i32_0 : i32, i32
  }
  func.func @transform_6(%arg0: i32) -> (i32, i32) {
    %c0_i32 = arith.constant 0 : i32
    %c0_i32_0 = arith.constant 0 : i32
    %c0_i32_1 = arith.constant 0 : i32
    return %c0_i32, %c0_i32_0 : i32, i32
  }
}

</mosaic_0001>

<bundles_post_ra>
// kernel: tpu_custom_call.1
= control target key start
LH: loop header
LB: loop body
LE: loop exit
PB: predicated region body
PF: predicated region fallthrough
CT: control target
= control target key end

     0   :  { %vm30_vm0 = vcmask 64512   ;;  %s745_s0 = inlined_call_operand.vmem [shape: f32[64,8], index: 0, kind: input, shape index: {}]   ;;  %s746_s1 = inlined_call_operand.vmem [shape: f32[8,24], index: 1, kind: input, shape index: {}]   ;;  %s747_s2 = inlined_call_operand.vmem [shape: f32[8,24], index: 2, kind: input, shape index: {}]   ;;  %s748_s3 = inlined_call_operand.vmem [shape: f32[24,8], index: 3, kind: input, shape index: {}]   ;;  %s749_s4 = inlined_call_operand.vmem [shape: f32[64,24], index: 4, kind: output, shape index: {0}]   ;;  %s750_s5 = inlined_call_operand.hbm [shape: f32[8,64], index: 5, kind: output, shape index: {1}]   ;;  %s751_s6 = inlined_call_operand.vmem [shape: f32[64,8], index: 6, kind: output, shape index: {2}]  }
   0x1   :  { %v29_v0 = vld [vmem:[%s746_s1] sm:$0xff]  ;;  %v22_v2 = vld [vmem:[%s745_s0 + $0x8] sm:$0xff]  ;;  %v23_v3 = vld [vmem:[%s745_s0 + $0x10] sm:$0xff] }
   0x2   :  { %v21_v1 = vld [vmem:[%s745_s0] sm:$0xff]  ;;  %461 = vmatprep.subr.mxu0 %v29_v0  ;;  %v270_v5 = vld [vmem:[%s748_s3 + $0x8] sm:$0xff] }
   0x3   :  { %463 = vmatprep.mubr.msk.f32.mxu0 %vm30_vm0, %v21_v1  ;;  %462 = vmatpush3.msra.mxu0 %v29_v0  ;;  %v269_v4 = vld [vmem:[%s748_s3] sm:$0xff] }
   0x4   :  { %464 = vmatmul.mubr.msk.f32.vlgmr.msra.gmra.mrb[0].mxu0 %vm30_vm0, %v22_v2 }
   0x5   :  { %12 = vsyncpa [#allocation3], 0  ;;  %466 = vmatprep.mubr.msk.f32.mxu0 %vm30_vm0, %v23_v3  ;;  %v24_v6 = vld [vmem:[%s745_s0 + $0x18] sm:$0xff]  ;;  %v528_v7 = vpack.c.bf16 %v270_v5, %v269_v4  ;;  %v25_v8 = vld [vmem:[%s745_s0 + $0x20] sm:$0xff]  ;;  %v560_v13 = vmov 0.0|0.0   ;;  %vm561_vm1 = vmmov 0  }
   0x6   :  { %v26_v9 = vld [vmem:[%s745_s0 + $0x28] sm:$0xff]  ;;  %v27_v10 = vld [vmem:[%s745_s0 + $0x30] sm:$0xff]  ;;  %v28_v11 = vld [vmem:[%s745_s0 + $0x38] sm:$0xff]  ;;  %512 = vmatprep.subr.bf16.mxu1 %v560_v13  ;;  %v562_v14 = vmov 0.0   ;;  %vm160_vm2 = vcmask 195584   ;;  %s563_s23 = smov [#allocation2]  }
   0x7   :  { %529 = vmatprep.subr.bf16.mxu0 %v528_v7  ;;  %v271_v12 = vld [vmem:[%s748_s3 + $0x10] sm:$0xff]  ;;  %491 = vmatprep.mubr.msk.f32.mxu1 %vm561_vm1, %v562_v14  ;;  %vm649_vm3 = vmpackc.low %vm160_vm2, %vm160_vm2  ;;  %v169_v28 = vld [vmem:[%s747_s2] sm:$0xff]  ;;  %s393_s24 = sshll.u32 %s563_s23, 4  ;;  %vm267_vm4 = vcmask 523264   ;;  %s394_s24 = int_to_ptr.vmem [resolvable:$true] %s393_s24 }
   0x8   :  { %467 = vmatmul.mubr.msk.f32.gmra.mrb[2].mxu0 %vm30_vm0, %v24_v6  ;;  %s536_s25 = scalar_lea.vmem %s394_s24, 128  ;;  %p541_p1 = scmp.lt.s32.totalorder %s394_s24, %s394_s24 }
   0x9   :  { %469 = vmatprep.mubr.msk.f32.mxu0 %vm30_vm0, %v25_v8  ;;  %531 = vmatpush3.bf16.msra.mxu0 %v528_v7  ;;  %p537_p0 = scmp.ne.s32.totalorder %s394_s24, %s536_s25  ;;  %p542_p2 = scmp.lt.s32.totalorder %s536_s25, %s536_s25 }
   0xa   :  { %498 = vmatprep.subr.mxu0 %v271_v12 }
   0xb   :  { %p543_p3 = por %p542_p2, %p541_p1 }
   0xc   :  { %470 = vmatmul.mubr.msk.f32.gmra.mrb[4].mxu0 %vm30_vm0, %v26_v9 }
   0xd   :  { %472 = vmatprep.mubr.msk.f32.mxu0 %vm30_vm0, %v27_v10  ;;  %499 = vmatpush3.msra.mxu0 %v271_v12  ;;  %p544_p4 = pnand %p543_p3, %p537_p0 }
  0x10   :  { %473 = vmatmul.mubr.msk.f32.gmra.mrb[6].mxu0 %vm30_vm0, %v28_v11 }
  0xd7   :  { %v465_v15 = vpop.f32.mrb[0].mxu0 }
  0xd8   :  { %162 = vst.msk [vmem:[%s749_s4 + $0x8] sm:$0xff] %vm160_vm2, %v465_v15  ;;  %v121_v16 = vpop.f32.mrb[1].mxu0 }
  0xd9   :  { %161 = vst.msk [vmem:[%s749_s4] sm:$0xff] %vm160_vm2, %v121_v16  ;;  %v513_v18 = vpack.c.bf16 %v465_v15, %v121_v16  ;;  %500 = vmatprep.mubr.msk.f32.mxu0 %vm160_vm2, %v121_v16 }
  0xda   :  { %501 = vmatmul.mubr.msk.f32.vlgmr.msra.gmra.mrb[8].mxu0 %vm160_vm2, %v465_v15 }
  0xdb   :  { %515 = vmatpush3.bf16.xpose.msk.msra.mxu1 %vm649_vm3, %v513_v18  ;;  %v468_v19 = vpop.f32.mrb[2].mxu0 }
  0xdc   :  { %164 = vst.msk [vmem:[%s749_s4 + $0x18] sm:$0xff] %vm160_vm2, %v468_v19  ;;  %v131_v20 = vpop.f32.mrb[3].mxu0  ;;  %516 = vmatprep.subr.bf16.mxu1 %v560_v13 }
  0xdd   :  { %163 = vst.msk [vmem:[%s749_s4 + $0x10] sm:$0xff] %vm160_vm2, %v131_v20  ;;  %v517_v21 = vpack.c.bf16 %v468_v19, %v131_v20  ;;  %503 = vmatprep.mubr.msk.f32.mxu0 %vm160_vm2, %v131_v20 }
  0xde   :  { %504 = vmatmul.mubr.msk.f32.gmra.mrb[10].mxu0 %vm160_vm2, %v468_v19 }
  0xdf   :  { %v471_v22 = vpop.f32.mrb[4].mxu0 }
  0xe0   :  { %166 = vst.msk [vmem:[%s749_s4 + $0x28] sm:$0xff] %vm160_vm2, %v471_v22  ;;  %v141_v23 = vpop.f32.mrb[5].mxu0 }
  0xe1   :  { %165 = vst.msk [vmem:[%s749_s4 + $0x20] sm:$0xff] %vm160_vm2, %v141_v23  ;;  %v521_v24 = vpack.c.bf16 %v471_v22, %v141_v23  ;;  %506 = vmatprep.mubr.msk.f32.mxu0 %vm160_vm2, %v141_v23 }
  0xe2   :  { %507 = vmatmul.mubr.msk.f32.gmra.mrb[12].mxu0 %vm160_vm2, %v471_v22 }
  0xe3   :  { %519 = vmatpush3.bf16.xpose.msk.msra.mxu1 %vm649_vm3, %v517_v21  ;;  %v474_v25 = vpop.f32.mrb[6].mxu0 }
  0xe4   :  { %520 = vmatprep.subr.bf16.mxu1 %v560_v13  ;;  %168 = vst.msk [vmem:[%s749_s4 + $0x38] sm:$0xff] %vm160_vm2, %v474_v25  ;;  %v151_v26 = vpop.f32.mrb[7].mxu0 }
  0xe5   :  { %167 = vst.msk [vmem:[%s749_s4 + $0x30] sm:$0xff] %vm160_vm2, %v151_v26  ;;  %v525_v27 = vpack.c.bf16 %v474_v25, %v151_v26  ;;  %509 = vmatprep.mubr.msk.f32.mxu0 %vm160_vm2, %v151_v26 }
  0xe6   :  { %510 = vmatmul.mubr.msk.f32.gmra.mrb[14].mxu0 %vm160_vm2, %v474_v25 }
  0xeb   :  { %523 = vmatpush3.bf16.xpose.msk.msra.mxu1 %vm649_vm3, %v521_v24 }
  0xec   :  { %524 = vmatprep.subr.bf16.mxu1 %v560_v13 }
  0xf3   :  { %527 = vmatpush3.bf16.xpose.msk.msra.mxu1 %vm649_vm3, %v525_v27 }
  0xfa   :  { %492 = vmatmul.mubr.msk.f32.vlgmr.msra.gmra.mrb[0].mxu1 %vm160_vm2, %v169_v28 }
 0x1ad   :  { %v502_v29 = vpop.f32.mrb[8].mxu0 }
 0x1ae   :  { %378 = vst.msk [vmem:[%s751_s6 + $0x8] sm:$0xff] %vm30_vm0, %v502_v29  ;;  %v338_v30 = vpop.f32.mrb[9].mxu0 }
 0x1af   :  { %377 = vst.msk [vmem:[%s751_s6] sm:$0xff] %vm30_vm0, %v338_v30 }
 0x1b1   :  { %v505_v31 = vpop.f32.mrb[10].mxu0 }
 0x1b2   :  { %380 = vst.msk [vmem:[%s751_s6 + $0x18] sm:$0xff] %vm30_vm0, %v505_v31  ;;  %v348_v32 = vpop.f32.mrb[11].mxu0 }
 0x1b3   :  { %379 = vst.msk [vmem:[%s751_s6 + $0x10] sm:$0xff] %vm30_vm0, %v348_v32 }
 0x1b5   :  { %v508_v33 = vpop.f32.mrb[12].mxu0 }
 0x1b6   :  { %382 = vst.msk [vmem:[%s751_s6 + $0x28] sm:$0xff] %vm30_vm0, %v508_v33  ;;  %v358_v34 = vpop.f32.mrb[13].mxu0 }
 0x1b7   :  { %381 = vst.msk [vmem:[%s751_s6 + $0x20] sm:$0xff] %vm30_vm0, %v358_v34 }
 0x1b9   :  { %v511_v35 = vpop.f32.mrb[14].mxu0 }
 0x1ba   :  { %384 = vst.msk [vmem:[%s751_s6 + $0x38] sm:$0xff] %vm30_vm0, %v511_v35  ;;  %v368_v36 = vpop.f32.mrb[15].mxu0 }
 0x1bb   :  { %383 = vst.msk [vmem:[%s751_s6 + $0x30] sm:$0xff] %vm30_vm0, %v368_v36 }
 0x1cd   :  { %v263_v37 = vpop.f32.mrb[0].mxu1 }
 0x1ce   :  { %268 = vst.msk [vmem:[#allocation2] sm:$0xff] %vm267_vm4, %v263_v37  ;;  %v493_v38 = vpop.f32.mrb[1].mxu1 }
 0x1cf   :  { %547 = shalt.err (!%p544_p4)
}
 0x1d0   :  { %s548_s28 = scalar_lea.hbm %s750_s5, 128 }
 0x1d1   :  { %p549_p5 = scmp.ne.s32.totalorder %s750_s5, %s548_s28  ;;  %p552_p6 = scmp.lt.u32.totalorder %s548_s28, %s750_s5 }
 0x1d3   :  { %p554_p7 = pnand %p552_p6, %p549_p5 }
 0x1d5   :  { %557 = shalt.err (!%p554_p7)
}
 0x1d6   :  { %396 = dma.vmem_to_hbm [thread:$0]  %s394_s24, 128, %s750_s5, [#allocation3]  }
 0x1d7   :  { %558 = dma.done.wait [#allocation3], 128  }
 0x1d8   :  { %559 = vsyncadd [#allocation3], 4294967168 }
 0x1d9   :  { %406 = vsyncpa [#allocation3], 1 }

</bundles_post_ra>
